<compile_context>
chip_gen: v7x
topology: tpu7x:2x2x1
jax: 0.10.0
libtpu: 0.0.40
codegen_flags: <defaults>
</compile_context>

<pallas_src>
import functools
import math

import jax
import jax.numpy as jnp
from jax.experimental import pallas as pl
from jax.experimental.pallas import tpu as pltpu


# --------------------------------------------------------------------------- #
# Helpers
# --------------------------------------------------------------------------- #
def _round_up(x, m):
    return ((x + m - 1) // m) * m


def _sublane_align(dtype):
    return {4: 8, 2: 16, 1: 32}.get(jnp.dtype(dtype).itemsize, 8)


def _vmem_capacity_bytes():
    """Generation-aware VMEM capacity; conservative fallback if unknown."""
    try:
        info = pltpu.get_tpu_info()
        cap = getattr(info, "vmem_capacity_bytes", None)
        if cap:
            return int(cap)
    except Exception:
        pass
    return 64 * 1024 * 1024  # safe on every generation (v7x has 64 MiB)


def _largest_aligned_divisor(total, cap, step=128):
    """Largest t <= cap with t % step == 0 and total % t == 0 (total % step == 0)."""
    if total <= cap:
        return total
    t = (min(cap, total) // step) * step
    while t > step:
        if total % t == 0:
            return t
        t -= step
    return step


def _work_bytes(tm, tn, tk, k_pad, dtype_bytes):
    multi_k = (k_pad // tk) > 1
    return (2 * (tm * tk + tk * tn + tn) * dtype_bytes      # double-buffered inputs
            + 2 * tm * tn * dtype_bytes                     # double-buffered output
            + (tm * tn * 4 if multi_k else 0))              # f32 accumulator


def _select_tiles(batch, k_pad, n_pad, dtype_bytes, sub_align, budget):
    """Pick (tm, tn, tk): largest tiles (fast path first) fitting the VMEM budget."""
    tm = _round_up(min(_round_up(batch, sub_align), 512), sub_align)
    caps = [(n_pad, k_pad), (2048, 1024), (1024, 1024), (1024, 512),
            (512, 512), (512, 256), (256, 256), (128, 256), (128, 128)]
    while True:
        for tn_cap, tk_cap in caps:
            tn = _largest_aligned_divisor(n_pad, tn_cap)
            tk = _largest_aligned_divisor(k_pad, tk_cap)
            if _work_bytes(tm, tn, tk, k_pad, dtype_bytes) <= budget:
                return tm, tn, tk
        if tm <= sub_align:
            return tm, 128, 128
        tm = _round_up(max(sub_align, tm // 2), sub_align)


# --------------------------------------------------------------------------- #
# Kernels
# --------------------------------------------------------------------------- #
def _fc_kernel_single_k(x_ref, w_ref, b_ref, o_ref, *, relu: bool):
    """Whole-K block: y = relu?(x @ W + b), no accumulator scratch needed."""
    acc = jnp.dot(x_ref[...], w_ref[...], preferred_element_type=jnp.float32)
    acc = acc + b_ref[...].astype(jnp.float32)
    if relu:
        acc = jnp.maximum(acc, 0.0)
    o_ref[...] = acc.astype(o_ref.dtype)


def _fc_kernel_multi_k(x_ref, w_ref, b_ref, o_ref, acc_ref, *, relu: bool):
    """K-tiled path: f32 VMEM accumulator across the innermost 'arbitrary' axis."""
    @pl.when(pl.program_id(2) == 0)
    def _():
        acc_ref[...] = jnp.zeros_like(acc_ref)

    acc_ref[...] += jnp.dot(x_ref[...], w_ref[...],
                            preferred_element_type=jnp.float32)

    @pl.when(pl.program_id(2) == pl.num_programs(2) - 1)
    def _():
        acc = acc_ref[...] + b_ref[...].astype(jnp.float32)
        if relu:
            acc = jnp.maximum(acc, 0.0)
        o_ref[...] = acc.astype(o_ref.dtype)


# --------------------------------------------------------------------------- #
# Parameter preparation (one-time) and forward wrapper (per-call)
# --------------------------------------------------------------------------- #
def prepare_fc_params(weight, bias):
    """One-time prep of nn.Linear params: transpose to (K, N) and zero-pad.

    weight: (out_features, in_features)   -- PyTorch layout
    bias:   (out_features,)
    """
    n, k = weight.shape
    assert bias.shape == (n,), "bias shape mismatch"
    k_pad = _round_up(k, 128)
    n_pad = _round_up(n, 128)
    w_t = weight.T                                  # (K, N) canonical MXU layout
    if (k_pad, n_pad) != (k, n):
        w_t = jnp.pad(w_t, ((0, k_pad - k), (0, n_pad - n)))
    b = bias if n_pad == n else jnp.pad(bias, (0, n_pad - n))
    return {
        "w_t": w_t,                                 # (K_pad, N_pad)
        "bias": b.reshape(1, n_pad),                # (1, N_pad)
        "in_features": k,
        "out_features": n,
    }


def fc_forward(x, params, *, relu=True, tm=None, tn=None, tk=None):
    """Pallas implementation of FC.forward: y = relu?(x @ weight.T + bias)."""
    w_t = params["w_t"]
    b2d = params["bias"]
    k = params["in_features"]
    n = params["out_features"]

    batch, kx = x.shape
    assert kx == k, "in_features mismatch"
    k_pad, n_pad = w_t.shape

    dtype_bytes = jnp.dtype(x.dtype).itemsize
    sub_align = _sublane_align(x.dtype)

    vmem_cap = _vmem_capacity_bytes()
    budget = min(int(vmem_cap * 0.7), 96 * 1024 * 1024)

    tm_d, tn_d, tk_d = _select_tiles(batch, k_pad, n_pad, dtype_bytes,
                                     sub_align, budget)
    tm_sel = tm_d if tm is None else _round_up(
        min(tm, _round_up(batch, sub_align)), sub_align)
    tn_sel = tn_d if tn is None else _largest_aligned_divisor(n_pad, max(128, tn))
    tk_sel = tk_d if tk is None else _largest_aligned_divisor(k_pad, max(128, tk))

    m_pad = _round_up(batch, tm_sel)
    gm, gn, gk = m_pad // tm_sel, n_pad // tn_sel, k_pad // tk_sel

    # Give 2-TC chips (v7x) at least 2 parallel grid steps when the problem is
    # otherwise a single block; negligible cost on single-core chips.
    if tn is None and gm == 1 and gn == 1 and n_pad >= 256:
        tn_half = _largest_aligned_divisor(n_pad, n_pad // 2)
        if 128 <= tn_half < n_pad:
            tn_sel = tn_half
            gn = n_pad // tn_sel

    # Per-call activation pad only (cheap); weight/bias were padded at prep time.
    xp = x
    if m_pad != batch or k_pad != k:
        xp = jnp.pad(x, ((0, m_pad - batch), (0, k_pad - k)))

    cost = pl.CostEstimate(
        flops=2 * m_pad * n_pad * k_pad,
        transcendentals=0,
        bytes_accessed=(m_pad * k_pad * gn + k_pad * n_pad * gm + n_pad * gm
                        + m_pad * n_pad) * dtype_bytes,
    )

    if gk == 1:
        kernel = functools.partial(_fc_kernel_single_k, relu=relu)
        grid = (gm, gn)
        in_specs = [
            pl.BlockSpec((tm_sel, tk_sel), lambda i, j: (i, 0)),    # x tile
            pl.BlockSpec((tk_sel, tn_sel), lambda i, j: (0, j)),    # W tile (K,N)
            pl.BlockSpec((1, tn_sel), lambda i, j: (0, j)),         # bias tile
        ]
        out_specs = pl.BlockSpec((tm_sel, tn_sel), lambda i, j: (i, j))
        scratch_shapes = []
        semantics = ("parallel", "parallel")
    else:
        kernel = functools.partial(_fc_kernel_multi_k, relu=relu)
        grid = (gm, gn, gk)
        in_specs = [
            pl.BlockSpec((tm_sel, tk_sel), lambda i, j, kk: (i, kk)),
            pl.BlockSpec((tk_sel, tn_sel), lambda i, j, kk: (kk, j)),
            pl.BlockSpec((1, tn_sel), lambda i, j, kk: (0, j)),
        ]
        out_specs = pl.BlockSpec((tm_sel, tn_sel), lambda i, j, kk: (i, j))
        scratch_shapes = [pltpu.VMEM((tm_sel, tn_sel), jnp.float32)]
        semantics = ("parallel", "parallel", "arbitrary")

    out_padded = pl.pallas_call(
        kernel,
        out_shape=jax.ShapeDtypeStruct((m_pad, n_pad), x.dtype),
        grid_spec=pltpu.PrefetchScalarGridSpec(
            num_scalar_prefetch=0,
            grid=grid,
            in_specs=in_specs,
            out_specs=out_specs,
            scratch_shapes=scratch_shapes,
        ),
        compiler_params=pltpu.CompilerParams(
            dimension_semantics=semantics,
            vmem_limit_bytes=int(budget),
        ),
        cost_estimate=cost,
    )(xp, w_t, b2d)

    if m_pad == batch and n_pad == n:
        return out_padded
    return out_padded[:batch, :n]


# --------------------------------------------------------------------------- #
# Init + reference
# --------------------------------------------------------------------------- #
def init_fc_params(key, in_features, out_features, dtype=jnp.float32):
    """nn.Linear default init: U(-1/sqrt(in_features), 1/sqrt(in_features))."""
    kw, kb = jax.random.split(key)
    bound = 1.0 / math.sqrt(in_features)
    weight = jax.random.uniform(
        kw, (out_features, in_features), dtype, minval=-bound, maxval=bound)
    bias = jax.random.uniform(
        kb, (out_features,), dtype, minval=-bound, maxval=bound)
    return weight, bias


def _fc_reference(x, weight, bias, relu=True):
    y = jnp.dot(x, weight.T, precision=jax.lax.Precision.HIGHEST) + bias
    return jnp.maximum(y, 0.0) if relu else y


if __name__ == "__main__":
    key = jax.random.PRNGKey(0)

    # --- Case 1: small shapes consistent with FC, relu=True (default) --------
    k_x, k_p, key = jax.random.split(key, 3)
    B, in_f, out_f = 8, 32, 128
    x = jax.random.normal(k_x, (B, in_f), jnp.float32)
    weight, bias = init_fc_params(k_p, in_f, out_f)
    params = prepare_fc_params(weight, bias)

    y = jax.block_until_ready(fc_forward(x, params, relu=True))
    y_ref = _fc_reference(x, weight, bias, relu=True)
    assert y.shape == (B, out_f)
    assert jnp.allclose(y, y_ref, atol=1e-3, rtol=1e-3), "case 1 mismatch"

    # --- Case 2: non-divisible batch, single-K fast path, relu=False ---------
    k_x2, k_p2, key = jax.random.split(key, 3)
    B2, in_f2, out_f2 = 100, 1536, 384
    x2 = jax.random.normal(k_x2, (B2, in_f2), jnp.float32)
    weight2, bias2 = init_fc_params(k_p2, in_f2, out_f2)
    params2 = prepare_fc_params(weight2, bias2)

    y2 = jax.block_until_ready(fc_forward(x2, params2, relu=False))
    y2_ref = _fc_reference(x2, weight2, bias2, relu=False)
    assert y2.shape == (B2, out_f2)
    assert jnp.allclose(y2, y2_ref, atol=1e-3, rtol=1e-3), "case 2 mismatch"

    # --- Case 3: force the K-tiled accumulator path via tile overrides -------
    y3 = jax.block_until_ready(
        fc_forward(x2, params2, relu=True, tn=128, tk=512))
    y3_ref = _fc_reference(x2, weight2, bias2, relu=True)
    assert y3.shape == (B2, out_f2)
    assert jnp.allclose(y3, y3_ref, atol=1e-3, rtol=1e-3), "case 3 mismatch"

    print("KERNEL_OK")
</pallas_src>

<mosaic_0001>
module attributes {stable_mosaic.version = 11 : i64} {
  func.func @_fc_kernel_single_k(%arg0: i32, %arg1: i32, %arg2: memref<8x128xf32, #tpu.memory_space<vmem>>, %arg3: memref<128x128xf32, #tpu.memory_space<vmem>>, %arg4: memref<1x128xf32, #tpu.memory_space<vmem>>, %arg5: memref<8x128xf32, #tpu.memory_space<vmem>>) attributes {dimension_semantics = [#tpu.dimension_semantics<parallel>, #tpu.dimension_semantics<parallel>], iteration_bounds = array<i64: 1, 1>, scalar_prefetch = 0 : i64, scratch_operands = 0 : i64, tpu.core_type = #tpu.core_type<tc>, window_params = [{transform_indices = @transform_0, window_bounds = array<i64: 8, 128>}, {transform_indices = @transform_1, window_bounds = array<i64: 128, 128>}, {transform_indices = @transform_2, window_bounds = array<i64: 1, 128>}, {transform_indices = @transform_3, window_bounds = array<i64: 8, 128>}]} {
    %c0 = arith.constant 0 : index
    %c0_0 = arith.constant 0 : index
    %0 = vector.load %arg2[%c0, %c0_0] : memref<8x128xf32, #tpu.memory_space<vmem>>, vector<8x128xf32>
    %c0_1 = arith.constant 0 : index
    %c0_2 = arith.constant 0 : index
    %1 = vector.load %arg3[%c0_1, %c0_2] : memref<128x128xf32, #tpu.memory_space<vmem>>, vector<128x128xf32>
    %cst = arith.constant dense<0.000000e+00> : vector<8x128xf32>
    %2 = tpu.matmul %0, %1, %cst {dimension_numbers = #tpu.dot_dimension_numbers<[1], [0], [0], [1], [0, 0, 1, 1], [], []>} : vector<8x128xf32>, vector<128x128xf32>, vector<8x128xf32> -> vector<8x128xf32>
    %c0_3 = arith.constant 0 : index
    %c0_4 = arith.constant 0 : index
    %3 = vector.load %arg4[%c0_3, %c0_4] : memref<1x128xf32, #tpu.memory_space<vmem>>, vector<1x128xf32>
    %4 = vector.broadcast %3 : vector<1x128xf32> to vector<8x128xf32>
    %5 = arith.addf %2, %4 : vector<8x128xf32>
    %cst_5 = arith.constant 0.000000e+00 : f32
    %6 = vector.broadcast %cst_5 : f32 to vector<8x128xf32>
    %7 = arith.maximumf %5, %6 : vector<8x128xf32>
    %c0_6 = arith.constant 0 : index
    %c0_7 = arith.constant 0 : index
    %8 = vector.load %arg5[%c0_6, %c0_7] : memref<8x128xf32, #tpu.memory_space<vmem>>, vector<8x128xf32>
    tpu.vector_store %arg5[%c0_6, %c0_7], %7 {strides = array<i32>} : memref<8x128xf32, #tpu.memory_space<vmem>>, vector<8x128xf32>,
    return
  }
  func.func @transform_0(%arg0: i32, %arg1: i32) -> (i32, i32) {
    %c0_i32 = arith.constant 0 : i32
    %c0_i32_0 = arith.constant 0 : i32
    return %arg0, %c0_i32 : i32, i32
  }
  func.func @transform_1(%arg0: i32, %arg1: i32) -> (i32, i32) {
    %c0_i32 = arith.constant 0 : i32
    %c0_i32_0 = arith.constant 0 : i32
    return %c0_i32, %arg1 : i32, i32
  }
  func.func @transform_2(%arg0: i32, %arg1: i32) -> (i32, i32) {
    %c0_i32 = arith.constant 0 : i32
    %c0_i32_0 = arith.constant 0 : i32
    return %c0_i32, %arg1 : i32, i32
  }
  func.func @transform_3(%arg0: i32, %arg1: i32) -> (i32, i32) {
    %c0_i32 = arith.constant 0 : i32
    return %arg0, %arg1 : i32, i32
  }
}

</mosaic_0001>

<bundles_post_ra>
// kernel: tpu_custom_call.1
= control target key start
LH: loop header
LB: loop body
LE: loop exit
PB: predicated region body
PF: predicated region fallthrough
CT: control target
= control target key end

     0   :  { %8 = vsyncpa [#allocation3], 0  ;;  %s384_s0 = inlined_call_operand.hbm [shape: f32[8,128], index: 0, kind: input, shape index: {}]   ;;  %s385_s1 = inlined_call_operand.hbm [shape: f32[128,128], index: 1, kind: input, shape index: {}]   ;;  %s386_s2 = inlined_call_operand.vmem [shape: f32[1,128], index: 2, kind: input, shape index: {}]   ;;  %s387_s3 = inlined_call_operand.hbm [shape: f32[8,128], index: 3, kind: output, shape index: {}]  }
   0x1   :  { %9 = vsyncpa [#allocation6], 0 }
   0x2   :  { %10 = vsyncpa [#allocation4], 0  ;;  %s310_s12 = smov [#allocation2]   ;;  %s311_s14 = smov [#allocation5]  }
   0x3   :  { %s17_s13 = sshll.u32 %s310_s12, 4  ;;  %s26_s15 = sshll.u32 %s311_s14, 4  ;;  %s18_s13 = int_to_ptr.vmem [resolvable:$true] %s17_s13  ;;  %s338_s15 = int_to_ptr.vmem [resolvable:$true] %s26_s15 }
   0x4   :  { %s238_s18 = scalar_lea.hbm %s384_s0, 128 }
   0x5   :  { %p239_p0 = scmp.ne.s32.totalorder %s384_s0, %s238_s18  ;;  %p242_p1 = scmp.lt.u32.totalorder %s238_s18, %s384_s0 }
   0x7   :  { %p244_p2 = pnand %p242_p1, %p239_p0 }
   0x9   :  { %247 = shalt.err (!%p244_p2)
}
   0xa   :  { %s248_s23 = scalar_lea.vmem %s18_s13, 128  ;;  %p253_p4 = scmp.lt.s32.totalorder %s18_s13, %s18_s13 }
   0xb   :  { %p249_p3 = scmp.ne.s32.totalorder %s18_s13, %s248_s23  ;;  %p254_p5 = scmp.lt.s32.totalorder %s248_s23, %s248_s23 }
   0xd   :  { %p255_p6 = por %p254_p5, %p253_p4 }
   0xf   :  { %p256_p7 = pnand %p255_p6, %p249_p3 }
  0x11   :  { %259 = shalt.err (!%p256_p7)
}
  0x12   :  { %20 = dma.hbm_to_vmem [thread:$0]  %s384_s0, 128, %s18_s13, [#allocation3]  }
  0x13   :  { %s260_s28 = scalar_lea.hbm %s385_s1, 2048 }
  0x14   :  { %p261_p8 = scmp.ne.s32.totalorder %s385_s1, %s260_s28  ;;  %p264_p9 = scmp.lt.u32.totalorder %s260_s28, %s385_s1 }
  0x16   :  { %p266_p10 = pnand %p264_p9, %p261_p8 }
  0x18   :  { %269 = shalt.err (!%p266_p10)
}
  0x19   :  { %s270_s6 = scalar_lea.vmem %s338_s15, 2048  ;;  %p275_p12 = scmp.lt.s32.totalorder %s338_s15, %s338_s15 }
  0x1a   :  { %p271_p11 = scmp.ne.s32.totalorder %s338_s15, %s270_s6  ;;  %p276_p13 = scmp.lt.s32.totalorder %s270_s6, %s270_s6 }
  0x1c   :  { %p277_p0 = por %p276_p13, %p275_p12 }
  0x1e   :  { %p278_p1 = pnand %p277_p0, %p271_p11 }
  0x20   :  { %281 = shalt.err (!%p278_p1)
}
  0x21   :  { %s312_s0 = smov 128   ;;  %s313_s7 = smov 8  }
  0x22   :  { %32 = dma.hbm_to_vmem [thread:$0]  %s385_s1, 2048, %s338_s15, [#allocation6], %s312_s0, %s312_s0, %s313_s7  }
  0x23   :  { %304 = dma.done.wait [#allocation3], 128  }
  0x24   :  { %305 = vsyncadd [#allocation3], 4294967168 }
  0x25   :  { %306 = dma.done.wait [#allocation6], 2048  }
  0x26   :  { %307 = vsyncadd [#allocation6], 4294965248  ;;  %v314_v0 = vmov 0.0|0.0   ;;  %vm315_vm0 = vmmov 0   ;;  %v316_v1 = vmov 0.0   ;;  %v42_v2 = vld [vmem:[#allocation5] sm:$0xff] }
  0x27   :  { %206 = vmatprep.subr.bf16.mxu0 %v314_v0  ;;  %203 = vmatprep.mubr.msk.f32.mxu0 %vm315_vm0, %v316_v1  ;;  %v43_v3 = vld [vmem:[#allocation5 + $0x8] sm:$0xff]  ;;  %v44_v4 = vld [vmem:[#allocation5 + $0x10] sm:$0xff]  ;;  %v45_v6 = vld [vmem:[#allocation5 + $0x18] sm:$0xff]  ;;  %s317_s11 = smov [#allocation7]  }
  0x28   :  { %v207_v5 = vpack.c.bf16 %v43_v3, %v42_v2  ;;  %v210_v7 = vpack.c.bf16 %v45_v6, %v44_v4  ;;  %v46_v8 = vld [vmem:[#allocation5 + $0x20] sm:$0xff]  ;;  %v47_v9 = vld [vmem:[#allocation5 + $0x28] sm:$0xff]  ;;  %v48_v11 = vld [vmem:[#allocation5 + $0x30] sm:$0xff]  ;;  %s143_s12 = sshll.u32 %s317_s11, 4  ;;  %s144_s12 = int_to_ptr.vmem [resolvable:$true] %s143_s12 }
  0x29   :  { %v213_v10 = vpack.c.bf16 %v47_v9, %v46_v8  ;;  %v49_v12 = vld [vmem:[#allocation5 + $0x38] sm:$0xff]  ;;  %v50_v14 = vld [vmem:[#allocation5 + $0x40] sm:$0xff]  ;;  %v51_v15 = vld [vmem:[#allocation5 + $0x48] sm:$0xff]  ;;  %s282_s13 = scalar_lea.vmem %s144_s12, 128  ;;  %p287_p3 = scmp.lt.s32.totalorder %s144_s12, %s144_s12 }
  0x2a   :  { %208 = vmatpush3.bf16.msra.mxu0 %v207_v5  ;;  %v216_v13 = vpack.c.bf16 %v49_v12, %v48_v11  ;;  %v219_v16 = vpack.c.bf16 %v51_v15, %v50_v14  ;;  %v52_v17 = vld [vmem:[#allocation5 + $0x50] sm:$0xff]  ;;  %v53_v18 = vld [vmem:[#allocation5 + $0x58] sm:$0xff]  ;;  %v54_v20 = vld [vmem:[#allocation5 + $0x60] sm:$0xff]  ;;  %p283_p2 = scmp.ne.s32.totalorder %s144_s12, %s282_s13  ;;  %p288_p4 = scmp.lt.s32.totalorder %s282_s13, %s282_s13 }
  0x2b   :  { %209 = vmatprep.subr.bf16.mxu0 %v314_v0  ;;  %v222_v19 = vpack.c.bf16 %v53_v18, %v52_v17  ;;  %v55_v21 = vld [vmem:[#allocation5 + $0x68] sm:$0xff]  ;;  %v56_v23 = vld [vmem:[#allocation5 + $0x70] sm:$0xff]  ;;  %v57_v24 = vld [vmem:[#allocation5 + $0x78] sm:$0xff] }
  0x2c   :  { %v225_v22 = vpack.c.bf16 %v55_v21, %v54_v20  ;;  %v228_v25 = vpack.c.bf16 %v57_v24, %v56_v23  ;;  %v41_v26 = vld [vmem:[#allocation2] sm:$0xff]  ;;  %p289_p5 = por %p288_p4, %p287_p3 }
  0x2d   :  { %v153_v27 = vld [vmem:[%s386_s2] ss:$0 sm:$0xff] }
  0x2e   :  { %211 = vmatpush3.bf16.msra.mxu0 %v210_v7  ;;  %p290_p6 = pnand %p289_p5, %p283_p2 }
  0x2f   :  { %212 = vmatprep.subr.bf16.mxu0 %v314_v0 }
  0x32   :  { %214 = vmatpush3.bf16.msra.mxu0 %v213_v10 }
  0x33   :  { %215 = vmatprep.subr.bf16.mxu0 %v314_v0 }
  0x36   :  { %217 = vmatpush3.bf16.msra.mxu0 %v216_v13 }
  0x37   :  { %218 = vmatprep.subr.bf16.mxu0 %v314_v0 }
  0x3a   :  { %220 = vmatpush3.bf16.msra.mxu0 %v219_v16 }
  0x3b   :  { %221 = vmatprep.subr.bf16.mxu0 %v314_v0 }
  0x3e   :  { %223 = vmatpush3.bf16.msra.mxu0 %v222_v19 }
  0x3f   :  { %224 = vmatprep.subr.bf16.mxu0 %v314_v0 }
  0x42   :  { %226 = vmatpush3.bf16.msra.mxu0 %v225_v22 }
  0x43   :  { %227 = vmatprep.subr.bf16.mxu0 %v314_v0 }
  0x46   :  { %229 = vmatpush3.bf16.msra.mxu0 %v228_v25 }
  0x49   :  { %204 = vmatmul.mubr.f32.vlgmr.msra.gmra.mrb[0].mxu0 %v41_v26 }
 0x11c   :  { %v131_v28 = vpop.f32.mrb[0].mxu0 }
 0x11d   :  { %v132_v29 = vadd.f32 %v153_v27, %v131_v28  ;;  %v205_v30 = vpop.f32.mrb[1].mxu0 }
 0x11f   :  { %v135_v31 = vmax.f32 %v132_v29, 0.0 }
 0x121   :  { %136 = vst [vmem:[#allocation7] sm:$0xff] %v135_v31 }
 0x122   :  { %293 = shalt.err (!%p290_p6)
}
 0x123   :  { %s294_s16 = scalar_lea.hbm %s387_s3, 128 }
 0x124   :  { %p295_p7 = scmp.ne.s32.totalorder %s387_s3, %s294_s16  ;;  %p298_p8 = scmp.lt.u32.totalorder %s294_s16, %s387_s3 }
 0x126   :  { %p300_p9 = pnand %p298_p8, %p295_p7 }
 0x128   :  { %303 = shalt.err (!%p300_p9)
}
 0x129   :  { %146 = dma.vmem_to_hbm [thread:$0]  %s144_s12, 128, %s387_s3, [#allocation4]  }
 0x12a   :  { %308 = dma.done.wait [#allocation4], 128  }
 0x12b   :  { %309 = vsyncadd [#allocation4], 4294967168 }
 0x12c   :  { %150 = vsyncpa [#allocation3], 1 }
 0x12d   :  { %151 = vsyncpa [#allocation6], 1 }
 0x12e   :  { %152 = vsyncpa [#allocation4], 1 }

</bundles_post_ra>
